<compile_context>
chip_gen: v7x
topology: tpu7x:2x2x1
jax: 0.10.0
libtpu: 0.0.40
codegen_flags: <defaults>
</compile_context>

<pallas_src>
import functools

import jax
import jax.numpy as jnp
from jax.experimental import pallas as pl
from jax.experimental.pallas import tpu as pltpu


def _frn_kernel(x_ref, p_ref, o_ref, *, inv_hw, hw, mask_tail):
    # x_ref: (TR, HW) row block; p_ref: (TR, 4) = [gamma, beta, tau, eps_eff].
    x = x_ref[...].astype(jnp.float32)

    if mask_tail:
        # HW is not a multiple of 128: physically zero the tail-vreg pad lanes
        # so sum(x^2) cannot pick up unspecified VMEM contents.
        lane = jax.lax.broadcasted_iota(jnp.int32, x.shape, 1)
        xm = jnp.where(lane < hw, x, 0.0)
    else:
        xm = x

    # Exact mean over the true H*W elements (padded lanes contribute zero).
    nu2 = jnp.sum(xm * xm, axis=-1, keepdims=True) * inv_hw          # (TR, 1)

    p = p_ref[...]                                                   # (TR, 4) f32
    gamma = p[:, 0:1]
    beta = p[:, 1:2]
    tau = p[:, 2:3]
    eps_eff = p[:, 3:4]

    # Fold gamma into the rsqrt scale: saves one full-width (TR, HW) multiply.
    scale = gamma * jax.lax.rsqrt(nu2 + eps_eff)                     # (TR, 1)
    y = x * scale + beta                                             # addcmul
    y = jnp.maximum(y, tau)                                          # TLU
    o_ref[...] = y.astype(o_ref.dtype)


def _round_down_mult(v, m):
    return max(m, (v // m) * m)


def frn_layer(x_nchw, gamma, beta, tau, eps_l, eps=1e-6):
    """x_nchw: (N, C, H, W); gamma/beta/tau/eps_l: (C, 1)."""
    N, C, H, W = x_nchw.shape
    HW = H * W
    R = N * C
    dtype = x_nchw.dtype
    itemsize = jnp.dtype(dtype).itemsize

    # Flat row view: free reshape, no data movement.
    x2d = x_nchw.reshape(R, HW)

    # Pack per-channel params into one (R, 4) f32 array (1 small DMA per step).
    f32 = jnp.float32
    eps_eff = jnp.asarray(eps, f32) + jnp.abs(eps_l.astype(f32))     # (C, 1)
    params = jnp.concatenate(
        [gamma.astype(f32), beta.astype(f32), tau.astype(f32), eps_eff], axis=1)
    params = jnp.tile(params, (N, 1))                                 # (R, 4)

    # Row-block size: ~1-2 MiB blocks already saturate HBM bandwidth; keep the
    # grid >= ~8 steps so the software pipeline double-buffers and both v7x
    # TensorCores get work. Ragged final blocks are handled by Pallas (partial
    # writeback), so no row padding is needed.
    row_bytes = HW * itemsize
    if R <= 8:
        tr = R                     # full extent (exempt from 8-divisibility)
    else:
        target_bytes = 2 * 1024 * 1024
        tr = min(max(target_bytes // max(row_bytes, 1), 8), R)
        tr = _round_down_mult(tr, 8)
        while tr > 8 and pl.cdiv(R, tr) < 8:
            tr = _round_down_mult(tr // 2, 8)
    num_blocks = pl.cdiv(R, tr)
    # TODO(synk): if HW is so large that even an 8-row block blows the VMEM
    # budget, switch to a two-pass sum(x^2) accumulation over an HW grid axis.

    kernel = functools.partial(
        _frn_kernel, inv_hw=1.0 / float(HW), hw=HW, mask_tail=(HW % 128 != 0))

    data_spec = pl.BlockSpec((tr, HW), lambda i: (i, 0))
    param_spec = pl.BlockSpec((tr, 4), lambda i: (i, 0))

    block_bytes = tr * HW * itemsize
    # 2x in + 2x out buffers + f32 intermediates + tiny param buffers, with
    # headroom, but never more than 48 MiB (v7x has only 64 MiB per TC).
    vmem_limit = int(min(max(6 * block_bytes + 8 * tr * 16, 16 << 20), 48 << 20))

    cost = pl.CostEstimate(
        flops=5 * R * HW,                  # square, reduce-add, scale, add, max
        transcendentals=R,                 # one rsqrt per (n, c) row
        bytes_accessed=2 * R * HW * itemsize + R * 4 * 4,
    )

    out2d = pl.pallas_call(
        kernel,
        out_shape=jax.ShapeDtypeStruct((R, HW), dtype),
        grid_spec=pltpu.PrefetchScalarGridSpec(
            num_scalar_prefetch=0,
            grid=(num_blocks,),
            in_specs=[data_spec, param_spec],
            out_specs=data_spec,
        ),
        compiler_params=pltpu.CompilerParams(
            dimension_semantics=("parallel",),
            vmem_limit_bytes=vmem_limit,
        ),
        cost_estimate=cost,
    )(x2d, params)

    return out2d.reshape(N, C, H, W)


def frn_layer_ref(x_nchw, gamma, beta, tau, eps_l, eps=1e-6):
    """Pure-JAX reference of the PyTorch forward."""
    N, C, H, W = x_nchw.shape
    x = x_nchw.reshape(N, C, -1).astype(jnp.float32)
    nu2 = jnp.mean(x * x, axis=2, keepdims=True)
    eps_eff = eps + jnp.abs(eps_l)[None, :, :]
    x = x * jax.lax.rsqrt(nu2 + eps_eff)
    x = beta[None, :, :] + gamma[None, :, :] * x
    x = jnp.maximum(x, tau[None, :, :])
    return x.reshape(N, C, H, W).astype(x_nchw.dtype)


if __name__ == "__main__":
    key = jax.random.PRNGKey(0)
    k_x, k_g, k_b, k_t, k_e, k_x2, k_x3 = jax.random.split(key, 7)

    N, C, H, W = 2, 4, 16, 16
    x = jax.random.normal(k_x, (N, C, H, W), dtype=jnp.float32)

    # Parameters (PyTorch init: gamma=ones, beta=zeros, tau=zeros, eps_l=zeros)
    # perturbed so the affine / TLU / learnable-eps paths are exercised.
    gamma = jnp.ones((C, 1), jnp.float32) + 0.1 * jax.random.normal(k_g, (C, 1))
    beta = 0.1 * jax.random.normal(k_b, (C, 1), dtype=jnp.float32)
    tau = 0.1 * jax.random.normal(k_t, (C, 1), dtype=jnp.float32)
    eps_l = 0.01 * jax.random.normal(k_e, (C, 1), dtype=jnp.float32)

    out = frn_layer(x, gamma, beta, tau, eps_l)
    jax.block_until_ready(out)
    ref = frn_layer_ref(x, gamma, beta, tau, eps_l)
    assert out.shape == (N, C, H, W)
    assert jnp.allclose(out, ref, atol=1e-5, rtol=1e-5), "mismatch vs reference"

    # Non-128-multiple spatial size -> in-kernel tail-lane masking path
    # (no wrapper padding; mean divisor stays the true H*W).
    H2, W2 = 10, 10
    x2 = jax.random.normal(k_x2, (N, C, H2, W2), dtype=jnp.float32)
    out2 = frn_layer(x2, gamma, beta, tau, eps_l)
    jax.block_until_ready(out2)
    ref2 = frn_layer_ref(x2, gamma, beta, tau, eps_l)
    assert out2.shape == (N, C, H2, W2)
    assert jnp.allclose(out2, ref2, atol=1e-5, rtol=1e-5), "mismatch (ragged HW)"

    # Larger row count -> multi-step 1-D grid with a ragged final row block.
    N3, C3 = 3, 12
    gamma3 = jnp.ones((C3, 1), jnp.float32) + 0.1 * jax.random.normal(k_g, (C3, 1))
    beta3 = 0.1 * jax.random.normal(k_b, (C3, 1), dtype=jnp.float32)
    tau3 = 0.1 * jax.random.normal(k_t, (C3, 1), dtype=jnp.float32)
    eps_l3 = 0.01 * jax.random.normal(k_e, (C3, 1), dtype=jnp.float32)
    x3 = jax.random.normal(k_x3, (N3, C3, H2, W2), dtype=jnp.float32)
    out3 = frn_layer(x3, gamma3, beta3, tau3, eps_l3)
    jax.block_until_ready(out3)
    ref3 = frn_layer_ref(x3, gamma3, beta3, tau3, eps_l3)
    assert out3.shape == (N3, C3, H2, W2)
    assert jnp.allclose(out3, ref3, atol=1e-5, rtol=1e-5), "mismatch (multi-block)"

    print("KERNEL_OK")
</pallas_src>

<mosaic_0001>
module attributes {stable_mosaic.version = 11 : i64} {
  func.func @_frn_kernel(%arg0: i32, %arg1: memref<8x256xf32, #tpu.memory_space<vmem>>, %arg2: memref<8x4xf32, #tpu.memory_space<vmem>>, %arg3: memref<8x256xf32, #tpu.memory_space<vmem>>) attributes {dimension_semantics = [#tpu.dimension_semantics<parallel>], iteration_bounds = array<i64: 1>, scalar_prefetch = 0 : i64, scratch_operands = 0 : i64, tpu.core_type = #tpu.core_type<tc>, window_params = [{transform_indices = @transform_0, window_bounds = array<i64: 8, 256>}, {transform_indices = @transform_1, window_bounds = array<i64: 8, 4>}, {transform_indices = @transform_2, window_bounds = array<i64: 8, 256>}]} {
    %c0 = arith.constant 0 : index
    %c0_0 = arith.constant 0 : index
    %0 = vector.load %arg1[%c0, %c0_0] : memref<8x256xf32, #tpu.memory_space<vmem>>, vector<8x256xf32>
    %1 = arith.mulf %0, %0 : vector<8x256xf32>
    %cst = arith.constant dense<0.000000e+00> : vector<8xf32>
    %2 = vector.multi_reduction <add>, %1, %cst [1] : vector<8x256xf32> to vector<8xf32>
    %3 = vector.shape_cast %2 : vector<8xf32> to vector<8x1xf32>
    %cst_1 = arith.constant 3.906250e-03 : f32
    %4 = vector.broadcast %cst_1 : f32 to vector<8x1xf32>
    %5 = arith.mulf %3, %4 : vector<8x1xf32>
    %c0_2 = arith.constant 0 : index
    %c0_3 = arith.constant 0 : index
    %6 = vector.load %arg2[%c0_2, %c0_3] : memref<8x4xf32, #tpu.memory_space<vmem>>, vector<8x4xf32>
    %7 = vector.extract_strided_slice %6 {offsets = [0, 0], sizes = [8, 1], strides = [1, 1]} : vector<8x4xf32> to vector<8x1xf32>
    %8 = vector.extract_strided_slice %6 {offsets = [0, 1], sizes = [8, 1], strides = [1, 1]} : vector<8x4xf32> to vector<8x1xf32>
    %9 = vector.extract_strided_slice %6 {offsets = [0, 2], sizes = [8, 1], strides = [1, 1]} : vector<8x4xf32> to vector<8x1xf32>
    %10 = vector.extract_strided_slice %6 {offsets = [0, 3], sizes = [8, 1], strides = [1, 1]} : vector<8x4xf32> to vector<8x1xf32>
    %11 = arith.addf %5, %10 : vector<8x1xf32>
    %12 = math.rsqrt %11 : vector<8x1xf32>
    %13 = arith.mulf %7, %12 : vector<8x1xf32>
    %14 = vector.broadcast %13 : vector<8x1xf32> to vector<8x256xf32>
    %15 = arith.mulf %0, %14 : vector<8x256xf32>
    %16 = vector.broadcast %8 : vector<8x1xf32> to vector<8x256xf32>
    %17 = arith.addf %15, %16 : vector<8x256xf32>
    %18 = vector.broadcast %9 : vector<8x1xf32> to vector<8x256xf32>
    %19 = arith.maximumf %17, %18 : vector<8x256xf32>
    %c0_4 = arith.constant 0 : index
    %c0_5 = arith.constant 0 : index
    %20 = vector.load %arg3[%c0_4, %c0_5] : memref<8x256xf32, #tpu.memory_space<vmem>>, vector<8x256xf32>
    tpu.vector_store %arg3[%c0_4, %c0_5], %19 {strides = array<i32>} : memref<8x256xf32, #tpu.memory_space<vmem>>, vector<8x256xf32>,
    return
  }
  func.func @transform_0(%arg0: i32) -> (i32, i32) {
    %c0_i32 = arith.constant 0 : i32
    %c0_i32_0 = arith.constant 0 : i32
    return %arg0, %c0_i32 : i32, i32
  }
  func.func @transform_1(%arg0: i32) -> (i32, i32) {
    %c0_i32 = arith.constant 0 : i32
    %c0_i32_0 = arith.constant 0 : i32
    return %arg0, %c0_i32 : i32, i32
  }
  func.func @transform_2(%arg0: i32) -> (i32, i32) {
    %c0_i32 = arith.constant 0 : i32
    %c0_i32_0 = arith.constant 0 : i32
    return %arg0, %c0_i32 : i32, i32
  }
}

</mosaic_0001>

<bundles_post_ra>
// kernel: tpu_custom_call.1
= control target key start
LH: loop header
LB: loop body
LE: loop exit
PB: predicated region body
PF: predicated region fallthrough
CT: control target
= control target key end

     0   :  { %7 = vsyncpa [#allocation3], 0  ;;  %s185_s0 = inlined_call_operand.hbm [shape: f32[8,256], index: 0, kind: input, shape index: {}]   ;;  %s186_s1 = inlined_call_operand.vmem [shape: f32[8,4], index: 1, kind: input, shape index: {}]   ;;  %s187_s2 = inlined_call_operand.hbm [shape: f32[8,256], index: 2, kind: output, shape index: {}]  }
   0x1   :  { %8 = vsyncpa [#allocation4], 0  ;;  %s137_s9 = smov [#allocation2]   ;;  %s89_s13 = scalar_lea.hbm %s185_s0, 256 }
   0x2   :  { %s15_s10 = sshll.u32 %s137_s9, 4  ;;  %p90_p0 = scmp.ne.s32.totalorder %s185_s0, %s89_s13  ;;  %s16_s10 = int_to_ptr.vmem [resolvable:$true] %s15_s10 }
   0x3   :  { %p93_p1 = scmp.lt.u32.totalorder %s89_s13, %s185_s0 }
   0x5   :  { %p95_p2 = pnand %p93_p1, %p90_p0 }
   0x7   :  { %98 = shalt.err (!%p95_p2)
}
   0x8   :  { %s99_s18 = scalar_lea.vmem %s16_s10, 256  ;;  %p104_p4 = scmp.lt.s32.totalorder %s16_s10, %s16_s10 }
   0x9   :  { %p100_p3 = scmp.ne.s32.totalorder %s16_s10, %s99_s18  ;;  %p105_p5 = scmp.lt.s32.totalorder %s99_s18, %s99_s18 }
   0xb   :  { %p106_p6 = por %p105_p5, %p104_p4 }
   0xd   :  { %p107_p7 = pnand %p106_p6, %p100_p3 }
   0xf   :  { %110 = shalt.err (!%p107_p7)
}
  0x10   :  { %18 = dma.hbm_to_vmem [thread:$0]  %s185_s0, 256, %s16_s10, [#allocation3]  }
  0x11   :  { %133 = dma.done.wait [#allocation3], 256  }
  0x12   :  { %134 = vsyncadd [#allocation3], 4294967040  ;;  %v24_v0 = vld [vmem:[#allocation2] sm:$0xff]  ;;  %v25_v1 = vld [vmem:[#allocation2 + $0x8] sm:$0xff]  ;;  %v138_v6 = vmov 1   ;;  %v139_v10 = vmov 0  }
  0x13   :  { %v26_v2 = vmul.f32 %v24_v0, %v24_v0  ;;  %v27_v3 = vmul.f32 %v25_v1, %v25_v1  ;;  %v32_v5 = vld [vmem:[%s186_s1] sm:$0xff]  ;;  %83 = vset.pattern.permute.xlu1 %v138_v6  ;;  %v140_v11 = vmov 2   ;;  %s141_s0 = smov 125   ;;  %s142_s1 = smov [#allocation5]  }
  0x14   :  { %49 = vperm.xlu1 %83, %v32_v5   ;;  %86 = vset.pattern.permute.xlu0 %v140_v11  ;;  %s68_s23 = sshll.u32 %s142_s1, 4  ;;  %s69_s23 = int_to_ptr.vmem [resolvable:$true] %s68_s23 }
  0x15   :  { %v28_v4 = vadd.f32 %v27_v3, %v26_v2  ;;  %s111_s24 = scalar_lea.vmem %s69_s23, 256  ;;  %p116_p9 = scmp.lt.s32.totalorder %s69_s23, %s69_s23 }
  0x16   :  { %p112_p8 = scmp.ne.s32.totalorder %s69_s23, %s111_s24  ;;  %p117_p10 = scmp.lt.s32.totalorder %s111_s24, %s111_s24 }
  0x17   :  { %29 = vadd.xlane.f32.xlu0 %v28_v4 }
  0x18   :  { %84 = vset.pattern.permute.xlu1 %v139_v10  ;;  %p118_p11 = por %p117_p10, %p116_p9 }
  0x1a   :  { %p119_p12 = pnand %p118_p11, %p112_p8 }
  0x93   :  { %v50_v15 = vpop.permute.xlu1 %49 }
  0xa4   :  { %v30_v7 = vpop.xlane.xlu0 %29 }
  0xa5   :  { %v31_v8 = vmul.f32 0.00390625, %v30_v7 }
  0xa7   :  { %v33_v9 = vadd.f32 %v32_v5, %v31_v8 }
  0xa9   :  { %87 = vrsqrt.f32 %v33_v9 }
  0xb3   :  { %v88_v12 = vpop.eup %87 }
  0xb4   :  { %36 = vrot.lane.b32.xlu0 %v88_v12, %s141_s0 }
 0x126   :  { %v37_v13 = vpop.permute.xlu0 %36 }
 0x127   :  { %v39_v14 = vmul.f32 %v37_v13, %v32_v5 }
 0x129   :  { %42 = vperm.xlu1 %84, %v39_v14  }
 0x12d   :  { %85 = vset.pattern.permute.xlu1 %v140_v11 }
 0x12e   :  { %55 = vperm.xlu1 %85, %v32_v5  }
 0x1a8   :  { %v43_v16 = vpop.permute.xlu1 %42 }
 0x1a9   :  { %v45_v17 = vmul.f32 %v43_v16, %v24_v0  ;;  %v46_v18 = vmul.f32 %v43_v16, %v25_v1 }
 0x1ab   :  { %v52_v19 = vadd.f32 %v50_v15, %v45_v17  ;;  %v53_v20 = vadd.f32 %v50_v15, %v46_v18 }
 0x1ad   :  { %v56_v21 = vpop.permute.xlu1 %55 }
 0x1ae   :  { %v58_v22 = vmax.f32 %v52_v19, %v56_v21  ;;  %v59_v23 = vmax.f32 %v53_v20, %v56_v21 }
 0x1b0   :  { %60 = vst [vmem:[#allocation5] sm:$0xff] %v58_v22  ;;  %61 = vst [vmem:[#allocation5 + $0x8] sm:$0xff] %v59_v23 }
 0x1b1   :  { %122 = shalt.err (!%p119_p12)
}
 0x1b2   :  { %s123_s27 = scalar_lea.hbm %s187_s2, 256 }
 0x1b3   :  { %p124_p13 = scmp.ne.s32.totalorder %s187_s2, %s123_s27  ;;  %p127_p0 = scmp.lt.u32.totalorder %s123_s27, %s187_s2 }
 0x1b5   :  { %p129_p1 = pnand %p127_p0, %p124_p13 }
 0x1b7   :  { %132 = shalt.err (!%p129_p1)
}
 0x1b8   :  { %71 = dma.vmem_to_hbm [thread:$0]  %s69_s23, 256, %s187_s2, [#allocation4]  }
 0x1b9   :  { %135 = dma.done.wait [#allocation4], 256  }
 0x1ba   :  { %136 = vsyncadd [#allocation4], 4294967040 }
 0x1bb   :  { %75 = vsyncpa [#allocation3], 1 }
 0x1bc   :  { %76 = vsyncpa [#allocation4], 1 }

</bundles_post_ra>
